<compile_context>
chip_gen: v6e
topology: v6e:2x2x1
jax: 0.10.0
libtpu: 0.0.40
codegen_flags: <defaults>
</compile_context>

<pallas_src>
import functools

import jax
import jax.numpy as jnp
from jax.experimental import pallas as pl
from jax.experimental.pallas import tpu as pltpu


# --------------------------------- kernel --------------------------------------

def _tcn_fused_kernel(x_ref, w1_ref, b1_ref, w2_ref, b2_ref, o_ref,
                      a_pad, b_pad, *, kernel_size, dilations, m_alloc,
                      seq_len, batch_block):
    """Fused TCN forward for one block of `batch_block` batch rows.

    x_ref  : (BB, C, T)        input activations
    w1_ref : (L, K, C, C)      conv1 per-tap weights (pre-cast to compute dtype)
    b1_ref : (L, C, 1)         conv1 bias (f32)
    w2_ref : (L, K, C, C)      conv2 per-tap weights
    b2_ref : (L, C, 1)         conv2 bias (f32)
    o_ref  : (BB, C, T)        output
    a_pad  : VMEM (BB, C, M+T) current block input, left halo of M zeros
    b_pad  : VMEM (BB, C, M+T) intermediate out1, left halo of M zeros
    """
    K, M, T, BB = kernel_size, m_alloc, seq_len, batch_block
    C = o_ref.shape[1]
    n_layers = len(dilations)
    compute_dtype = w1_ref.dtype

    # Zero the causal left-pad halo; it is never written afterwards, so it acts
    # as the zero padding for every conv in every layer.  Re-zeroed every grid
    # step on purpose: under megacore "parallel" sharding each core owns its own
    # private scratch and must initialize it itself.
    if M > 0:
        halo = jnp.zeros((BB, C, M), jnp.float32)
        a_pad[:, :, :M] = halo
        b_pad[:, :, :M] = halo

    # Stage the input into the halo-padded, lane-aligned scratch (shifted taps
    # and deeper layers read from it); keep the same value live in vregs for the
    # aligned tap and the residual (no reload).
    x_all = x_ref[...].astype(jnp.float32)
    a_pad[:, :, M:] = x_all

    def causal_dilated_conv(src_pad, row, aligned_live, w_ref, b_ref, li, d):
        # K small (C, C) x (C, T) matmuls accumulated in f32.  No concatenated
        # (K*C, T) temp; the aligned tap (j = K-1) is fed from the live value.
        acc = jnp.dot(w_ref[li, K - 1],
                      aligned_live.astype(compute_dtype),
                      preferred_element_type=jnp.float32)
        for j in range(K - 1):
            off = (K - 1 - j) * d
            tap = src_pad[row, :, M - off: M - off + T].astype(compute_dtype)
            acc = acc + jnp.dot(w_ref[li, j], tap,
                                preferred_element_type=jnp.float32)
        return acc + b_ref[li]                        # bias broadcast over T

    for row in range(BB):                             # static unroll over batch block
        cur = x_all[row]                              # (C, T) live activation
        for li, d in enumerate(dilations):
            # out1 = Dropout2d(ReLU(Chomp(conv1(x))))   (dropout = identity, eval)
            out1 = jnp.maximum(
                causal_dilated_conv(a_pad, row, cur, w1_ref, b1_ref, li, d), 0.0)
            if K > 1:
                b_pad[row, :, M:] = out1              # conv2's shifted taps need it
            # out2 = Dropout2d(ReLU(Chomp(conv2(out1))))
            out2 = jnp.maximum(
                causal_dilated_conv(b_pad, row, out1, w2_ref, b2_ref, li, d), 0.0)
            # residual branch is the block input itself (downsample never exists).
            y = jnp.maximum(out2 + cur, 0.0)
            if li == n_layers - 1:
                o_ref[row] = y.astype(o_ref.dtype)
            else:
                if K > 1:
                    a_pad[row, :, M:] = y             # next layer's shifted taps
                cur = y


# ------------------------------ sizing helpers ----------------------------------

def _auto_batch_block(B, C, T_pad, m_alloc):
    """VMEM-aware batch block; keeps >=2 grid steps when possible (megacore/pipe)."""
    c_pad = -(-C // 8) * 8
    per_row = (2 * (m_alloc + T_pad) + 4 * T_pad) * c_pad * 4
    budget = 24 << 20                                  # conservative across v5e/v6e/v7x
    cap = max(1, budget // max(per_row, 1))
    target = max(1, min(cap, B // 2 if B >= 2 else 1))
    for bb in range(min(target, B), 0, -1):
        if B % bb == 0:
            return bb
    return 1


def _vmem_limit_bytes(bb, C, T_pad, m_alloc, packed):
    c_pad = -(-C // 8) * 8
    lanes = lambda n: -(-n // 128) * 128
    act = 2 * bb * c_pad * lanes(m_alloc + T_pad) * 4          # a_pad + b_pad
    io = 2 * 2 * bb * c_pad * lanes(T_pad) * 4                 # double-buffered x and o
    wts = 2 * sum(int(v.size) * v.dtype.itemsize for v in packed.values())
    need = act + io + wts
    # ~50% headroom for compiler temporaries; clamp to sane physical bounds.
    return int(min(100 * 2 ** 20, max(32 * 2 ** 20, int(need * 1.5))))


# --------------------------------- forward -------------------------------------

def temporal_conv_net(x, packed, *, kernel_size, batch_block=None):
    """Full TemporalConvNet forward as a single pallas_call.

    `packed` comes from pack_tcn_params(); its W dtype IS the MXU operand
    (compute) dtype -- pass bf16-packed weights for the v6e/v7x fast path.
    """
    B, C, T = x.shape
    W1, B1, W2, B2 = packed["W1"], packed["B1"], packed["W2"], packed["B2"]
    L, K = W1.shape[0], W1.shape[1]
    assert K == kernel_size
    assert W1.shape[2] == W1.shape[3] == C, (W1.shape, C)

    # Lane-dense stores: right-pad T to a multiple of 128 (causally safe -- no
    # output at t < T can see appended zeros), slice back afterwards.
    T_pad = -(-T // 128) * 128
    x_in = x if T_pad == T else jnp.pad(x, ((0, 0), (0, 0), (0, T_pad - T)))

    dilations = tuple(2 ** i for i in range(L))
    max_pad = (K - 1) * dilations[-1]
    # Round the causal halo up to a lane multiple so the activation slab in the
    # scratch stays 128-aligned (lane-dense loads/stores).
    m_alloc = -(-max_pad // 128) * 128 if max_pad > 0 else 0

    if batch_block is None:
        batch_block = _auto_batch_block(B, C, T_pad, m_alloc)
    assert B % batch_block == 0, (B, batch_block)
    grid = (B // batch_block,)

    kernel = functools.partial(
        _tcn_fused_kernel,
        kernel_size=K, dilations=dilations, m_alloc=m_alloc,
        seq_len=T_pad, batch_block=batch_block)

    vmem_limit = _vmem_limit_bytes(batch_block, C, T_pad, m_alloc, packed)

    y = pl.pallas_call(
        kernel,
        out_shape=jax.ShapeDtypeStruct((B, C, T_pad), x.dtype),
        grid_spec=pltpu.PrefetchScalarGridSpec(
            num_scalar_prefetch=0,
            grid=grid,
            in_specs=[
                pl.BlockSpec((batch_block, C, T_pad), lambda i: (i, 0, 0)),
                # Constant index maps -> weights/biases stay VMEM-resident
                # across the whole grid (no per-step re-DMA).
                pl.BlockSpec(W1.shape, lambda i: (0, 0, 0, 0)),
                pl.BlockSpec(B1.shape, lambda i: (0, 0, 0)),
                pl.BlockSpec(W2.shape, lambda i: (0, 0, 0, 0)),
                pl.BlockSpec(B2.shape, lambda i: (0, 0, 0)),
            ],
            out_specs=pl.BlockSpec((batch_block, C, T_pad), lambda i: (i, 0, 0)),
            scratch_shapes=[
                pltpu.VMEM((batch_block, C, m_alloc + T_pad), jnp.float32),  # a_pad
                pltpu.VMEM((batch_block, C, m_alloc + T_pad), jnp.float32),  # b_pad
            ],
        ),
        compiler_params=pltpu.CompilerParams(
            dimension_semantics=("parallel",),
            vmem_limit_bytes=vmem_limit),
    )(x_in, W1, B1, W2, B2)

    return y if T_pad == T else y[:, :, :T]


# --------------------------- parameter construction ----------------------------

def init_tcn_params(key, num_inputs, num_channels, kernel_size):
    """Per-layer params in PyTorch layout: w (C_out, C_in, K), b (C_out,)."""
    # The reference module builds conv2 with in_channels = n_inputs, so it only
    # runs when n_inputs == n_outputs for every block (and downsample is always
    # None).  Fail loudly on misconfigured channel lists.
    chans = [num_inputs] + list(num_channels)
    assert all(c == chans[0] for c in chans), (
        "TemporalConvNet reference requires n_inputs == n_outputs per block; "
        f"got channel chain {chans}")
    params = []
    for i, out_ch in enumerate(num_channels):
        in_ch = chans[i]
        key, k1, k2, k3, k4 = jax.random.split(key, 5)
        # weight_norm(dim=0) at init: g = ||v||  =>  effective weight == v.
        w1 = 0.01 * jax.random.normal(k1, (out_ch, in_ch, kernel_size), jnp.float32)
        b1 = 0.01 * jax.random.normal(k2, (out_ch,), jnp.float32)
        w2 = 0.01 * jax.random.normal(k3, (out_ch, in_ch, kernel_size), jnp.float32)
        b2 = 0.01 * jax.random.normal(k4, (out_ch,), jnp.float32)
        params.append(dict(w1=w1, b1=b1, w2=w2, b2=b2))
    return params


def pack_tcn_params(params, kernel_size, compute_dtype=jnp.float32):
    """One-time repack to kernel layout (hoisted out of the forward pass).

    Conv weights (C_out, C_in, K) -> per-tap (K, C_out, C_in), stacked over
    layers into (L, K, C, C), and PRE-CAST once to the MXU operand dtype
    (bf16 for the v6e/v7x fast path, f32 for exact validation).
    Biases -> (L, C, 1), kept f32 (added after the f32 accumulate).
    """
    def taps(w):
        c_out, c_in, k = w.shape
        assert k == kernel_size
        return jnp.transpose(w, (2, 0, 1)).astype(compute_dtype)

    return dict(
        W1=jnp.stack([taps(p["w1"]) for p in params]),
        B1=jnp.stack([p["b1"].reshape(-1, 1).astype(jnp.float32) for p in params]),
        W2=jnp.stack([taps(p["w2"]) for p in params]),
        B2=jnp.stack([p["b2"].reshape(-1, 1).astype(jnp.float32) for p in params]),
    )


# --------------------------- pure-JAX reference check ---------------------------

def _ref_causal_conv(x, w, b, dilation):
    B, C_in, T = x.shape
    C_out, _, K = w.shape
    pad = (K - 1) * dilation
    xp = jnp.pad(x, ((0, 0), (0, 0), (pad, 0)))
    y = jnp.zeros((B, C_out, T), jnp.float32)
    for j in range(K):
        y = y + jnp.einsum("oc,bct->bot", w[:, :, j],
                           xp[:, :, j * dilation:j * dilation + T])
    return y + b[None, :, None]


def _ref_forward(x, raw_params):
    for i, p in enumerate(raw_params):
        d = 2 ** i
        out1 = jax.nn.relu(_ref_causal_conv(x, p["w1"], p["b1"], d))
        out2 = jax.nn.relu(_ref_causal_conv(out1, p["w2"], p["b2"], d))
        x = jax.nn.relu(out2 + x)      # downsample is always None (see assert)
    return x


# ------------------------------------ main --------------------------------------

if __name__ == "__main__":
    key = jax.random.PRNGKey(0)
    kx, kp = jax.random.split(key)

    B, T = 2, 128
    num_inputs = 4
    num_channels = [4, 4]              # n_inputs == n_outputs per block (see assert)
    kernel_size = 2

    x = jax.random.normal(kx, (B, num_inputs, T), jnp.float32)
    raw_params = init_tcn_params(kp, num_inputs, num_channels, kernel_size)
    y_ref = _ref_forward(x, raw_params)

    # f32 compute path (exact check); auto batch block -> bb=1, grid=(2,).
    packed_f32 = pack_tcn_params(raw_params, kernel_size, compute_dtype=jnp.float32)
    y = temporal_conv_net(x, packed_f32, kernel_size=kernel_size)
    jax.block_until_ready(y)
    assert y.shape == (B, num_channels[-1], T)
    assert jnp.allclose(y, y_ref, atol=1e-5, rtol=1e-5), "mismatch vs. reference (f32)"

    # Batch-folded path: both batch rows in a single grid step.
    y_bb = temporal_conv_net(x, packed_f32, kernel_size=kernel_size, batch_block=2)
    jax.block_until_ready(y_bb)
    assert jnp.allclose(y_bb, y_ref, atol=1e-5, rtol=1e-5), "mismatch (batch_block=2)"

    # Non-128-multiple T exercises the wrapper's causally-safe right-pad + slice.
    T2 = 100
    y_short = temporal_conv_net(x[:, :, :T2], packed_f32, kernel_size=kernel_size)
    jax.block_until_ready(y_short)
    assert jnp.allclose(y_short, _ref_forward(x[:, :, :T2], raw_params),
                        atol=1e-5, rtol=1e-5), "mismatch (T not multiple of 128)"

    # bf16 MXU-operand path (weights pre-cast once at pack time, f32 accumulate).
    packed_bf16 = pack_tcn_params(raw_params, kernel_size, compute_dtype=jnp.bfloat16)
    y_bf16 = temporal_conv_net(x, packed_bf16, kernel_size=kernel_size)
    jax.block_until_ready(y_bf16)
    assert jnp.allclose(y_bf16, y_ref, atol=5e-2, rtol=5e-2), "mismatch (bf16 path)"

    print("KERNEL_OK")
</pallas_src>

<mosaic_0001>
module attributes {stable_mosaic.version = 11 : i64} {
  func.func @_tcn_fused_kernel(%arg0: i32, %arg1: memref<1x4x128xf32, #tpu.memory_space<vmem>>, %arg2: memref<2x2x4x4xf32, #tpu.memory_space<vmem>>, %arg3: memref<2x4x1xf32, #tpu.memory_space<vmem>>, %arg4: memref<2x2x4x4xf32, #tpu.memory_space<vmem>>, %arg5: memref<2x4x1xf32, #tpu.memory_space<vmem>>, %arg6: memref<1x4x128xf32, #tpu.memory_space<vmem>>, %arg7: memref<1x4x256xf32, #tpu.memory_space<vmem>>, %arg8: memref<1x4x256xf32, #tpu.memory_space<vmem>>) attributes {dimension_semantics = [#tpu.dimension_semantics<parallel>], iteration_bounds = array<i64: 2>, scalar_prefetch = 0 : i64, scratch_operands = 2 : i64, tpu.core_type = #tpu.core_type<tc>, window_params = [{transform_indices = @transform_0, window_bounds = array<i64: 1, 4, 128>}, {pipeline_mode = #tpu.pipeline_mode<synchronous>, transform_indices = @transform_1, window_bounds = array<i64: 2, 2, 4, 4>}, {pipeline_mode = #tpu.pipeline_mode<synchronous>, transform_indices = @transform_2, window_bounds = array<i64: 2, 4, 1>}, {pipeline_mode = #tpu.pipeline_mode<synchronous>, transform_indices = @transform_3, window_bounds = array<i64: 2, 2, 4, 4>}, {pipeline_mode = #tpu.pipeline_mode<synchronous>, transform_indices = @transform_4, window_bounds = array<i64: 2, 4, 1>}, {transform_indices = @transform_5, window_bounds = array<i64: 1, 4, 128>}]} {
    %cst = arith.constant 0.000000e+00 : f32
    %0 = vector.broadcast %cst : f32 to vector<1x4x128xf32>
    %c0 = arith.constant 0 : index
    %c0_0 = arith.constant 0 : index
    %c0_1 = arith.constant 0 : index
    %1 = vector.load %arg7[%c0, %c0_0, %c0_1] : memref<1x4x256xf32, #tpu.memory_space<vmem>>, vector<1x4x128xf32>
    tpu.vector_store %arg7[%c0, %c0_0, %c0_1], %0 {strides = array<i32>} : memref<1x4x256xf32, #tpu.memory_space<vmem>>, vector<1x4x128xf32>,
    %c0_2 = arith.constant 0 : index
    %c0_3 = arith.constant 0 : index
    %c0_4 = arith.constant 0 : index
    %2 = vector.load %arg8[%c0_2, %c0_3, %c0_4] : memref<1x4x256xf32, #tpu.memory_space<vmem>>, vector<1x4x128xf32>
    tpu.vector_store %arg8[%c0_2, %c0_3, %c0_4], %0 {strides = array<i32>} : memref<1x4x256xf32, #tpu.memory_space<vmem>>, vector<1x4x128xf32>,
    %c0_5 = arith.constant 0 : index
    %c0_6 = arith.constant 0 : index
    %c0_7 = arith.constant 0 : index
    %3 = vector.load %arg1[%c0_5, %c0_6, %c0_7] : memref<1x4x128xf32, #tpu.memory_space<vmem>>, vector<1x4x128xf32>
    %c0_8 = arith.constant 0 : index
    %c0_9 = arith.constant 0 : index
    %c128 = arith.constant 128 : index
    %4 = vector.load %arg7[%c0_8, %c0_9, %c128] : memref<1x4x256xf32, #tpu.memory_space<vmem>>, vector<1x4x128xf32>
    tpu.vector_store %arg7[%c0_8, %c0_9, %c128], %3 {strides = array<i32>} : memref<1x4x256xf32, #tpu.memory_space<vmem>>, vector<1x4x128xf32>,
    %5 = vector.shape_cast %3 : vector<1x4x128xf32> to vector<4x128xf32>
    %c0_10 = arith.constant 0 : index
    %c1 = arith.constant 1 : index
    %c0_11 = arith.constant 0 : index
    %c0_12 = arith.constant 0 : index
    %6 = vector.load %arg2[%c0_10, %c1, %c0_11, %c0_12] : memref<2x2x4x4xf32, #tpu.memory_space<vmem>>, vector<1x1x4x4xf32>
    %7 = vector.shape_cast %6 : vector<1x1x4x4xf32> to vector<4x4xf32>
    %cst_13 = arith.constant dense<0.000000e+00> : vector<4x128xf32>
    %8 = tpu.matmul %7, %5, %cst_13 {dimension_numbers = #tpu.dot_dimension_numbers<[1], [0], [0], [1], [0, 0, 1, 1], [], []>} : vector<4x4xf32>, vector<4x128xf32>, vector<4x128xf32> -> vector<4x128xf32>
    %c0_14 = arith.constant 0 : index
    %c0_15 = arith.constant 0 : index
    %c127 = arith.constant 127 : index
    %9 = vector.load %arg7[%c0_14, %c0_15, %c127] : memref<1x4x256xf32, #tpu.memory_space<vmem>>, vector<1x4x128xf32>
    %10 = vector.shape_cast %9 : vector<1x4x128xf32> to vector<4x128xf32>
    %c0_16 = arith.constant 0 : index
    %c0_17 = arith.constant 0 : index
    %c0_18 = arith.constant 0 : index
    %c0_19 = arith.constant 0 : index
    %11 = vector.load %arg2[%c0_16, %c0_17, %c0_18, %c0_19] : memref<2x2x4x4xf32, #tpu.memory_space<vmem>>, vector<1x1x4x4xf32>
    %12 = vector.shape_cast %11 : vector<1x1x4x4xf32> to vector<4x4xf32>
    %cst_20 = arith.constant dense<0.000000e+00> : vector<4x128xf32>
    %13 = tpu.matmul %12, %10, %cst_20 {dimension_numbers = #tpu.dot_dimension_numbers<[1], [0], [0], [1], [0, 0, 1, 1], [], []>} : vector<4x4xf32>, vector<4x128xf32>, vector<4x128xf32> -> vector<4x128xf32>
    %14 = arith.addf %8, %13 : vector<4x128xf32>
    %c0_21 = arith.constant 0 : index
    %c0_22 = arith.constant 0 : index
    %c0_23 = arith.constant 0 : index
    %15 = vector.load %arg3[%c0_21, %c0_22, %c0_23] : memref<2x4x1xf32, #tpu.memory_space<vmem>>, vector<1x4x1xf32>
    %16 = vector.shape_cast %15 : vector<1x4x1xf32> to vector<4x1xf32>
    %17 = vector.broadcast %16 : vector<4x1xf32> to vector<4x128xf32>
    %18 = arith.addf %14, %17 : vector<4x128xf32>
    %cst_24 = arith.constant 0.000000e+00 : f32
    %19 = vector.broadcast %cst_24 : f32 to vector<4x128xf32>
    %20 = arith.maximumf %18, %19 : vector<4x128xf32>
    %c0_25 = arith.constant 0 : index
    %c0_26 = arith.constant 0 : index
    %c128_27 = arith.constant 128 : index
    %21 = vector.load %arg8[%c0_25, %c0_26, %c128_27] : memref<1x4x256xf32, #tpu.memory_space<vmem>>, vector<1x4x128xf32>
    %22 = vector.shape_cast %21 : vector<1x4x128xf32> to vector<4x128xf32>
    %23 = vector.shape_cast %20 : vector<4x128xf32> to vector<1x4x128xf32>
    tpu.vector_store %arg8[%c0_25, %c0_26, %c128_27], %23 {strides = array<i32>} : memref<1x4x256xf32, #tpu.memory_space<vmem>>, vector<1x4x128xf32>,
    %c0_28 = arith.constant 0 : index
    %c1_29 = arith.constant 1 : index
    %c0_30 = arith.constant 0 : index
    %c0_31 = arith.constant 0 : index
    %24 = vector.load %arg4[%c0_28, %c1_29, %c0_30, %c0_31] : memref<2x2x4x4xf32, #tpu.memory_space<vmem>>, vector<1x1x4x4xf32>
    %25 = vector.shape_cast %24 : vector<1x1x4x4xf32> to vector<4x4xf32>
    %cst_32 = arith.constant dense<0.000000e+00> : vector<4x128xf32>
    %26 = tpu.matmul %25, %20, %cst_32 {dimension_numbers = #tpu.dot_dimension_numbers<[1], [0], [0], [1], [0, 0, 1, 1], [], []>} : vector<4x4xf32>, vector<4x128xf32>, vector<4x128xf32> -> vector<4x128xf32>
    %c0_33 = arith.constant 0 : index
    %c0_34 = arith.constant 0 : index
    %c127_35 = arith.constant 127 : index
    %27 = vector.load %arg8[%c0_33, %c0_34, %c127_35] : memref<1x4x256xf32, #tpu.memory_space<vmem>>, vector<1x4x128xf32>
    %28 = vector.shape_cast %27 : vector<1x4x128xf32> to vector<4x128xf32>
    %c0_36 = arith.constant 0 : index
    %c0_37 = arith.constant 0 : index
    %c0_38 = arith.constant 0 : index
    %c0_39 = arith.constant 0 : index
    %29 = vector.load %arg4[%c0_36, %c0_37, %c0_38, %c0_39] : memref<2x2x4x4xf32, #tpu.memory_space<vmem>>, vector<1x1x4x4xf32>
    %30 = vector.shape_cast %29 : vector<1x1x4x4xf32> to vector<4x4xf32>
    %cst_40 = arith.constant dense<0.000000e+00> : vector<4x128xf32>
    %31 = tpu.matmul %30, %28, %cst_40 {dimension_numbers = #tpu.dot_dimension_numbers<[1], [0], [0], [1], [0, 0, 1, 1], [], []>} : vector<4x4xf32>, vector<4x128xf32>, vector<4x128xf32> -> vector<4x128xf32>
    %32 = arith.addf %26, %31 : vector<4x128xf32>
    %c0_41 = arith.constant 0 : index
    %c0_42 = arith.constant 0 : index
    %c0_43 = arith.constant 0 : index
    %33 = vector.load %arg5[%c0_41, %c0_42, %c0_43] : memref<2x4x1xf32, #tpu.memory_space<vmem>>, vector<1x4x1xf32>
    %34 = vector.shape_cast %33 : vector<1x4x1xf32> to vector<4x1xf32>
    %35 = vector.broadcast %34 : vector<4x1xf32> to vector<4x128xf32>
    %36 = arith.addf %32, %35 : vector<4x128xf32>
    %cst_44 = arith.constant 0.000000e+00 : f32
    %37 = vector.broadcast %cst_44 : f32 to vector<4x128xf32>
    %38 = arith.maximumf %36, %37 : vector<4x128xf32>
    %39 = arith.addf %38, %5 : vector<4x128xf32>
    %cst_45 = arith.constant 0.000000e+00 : f32
    %40 = vector.broadcast %cst_45 : f32 to vector<4x128xf32>
    %41 = arith.maximumf %39, %40 : vector<4x128xf32>
    %c0_46 = arith.constant 0 : index
    %c0_47 = arith.constant 0 : index
    %c128_48 = arith.constant 128 : index
    %42 = vector.load %arg7[%c0_46, %c0_47, %c128_48] : memref<1x4x256xf32, #tpu.memory_space<vmem>>, vector<1x4x128xf32>
    %43 = vector.shape_cast %42 : vector<1x4x128xf32> to vector<4x128xf32>
    %44 = vector.shape_cast %41 : vector<4x128xf32> to vector<1x4x128xf32>
    tpu.vector_store %arg7[%c0_46, %c0_47, %c128_48], %44 {strides = array<i32>} : memref<1x4x256xf32, #tpu.memory_space<vmem>>, vector<1x4x128xf32>,
    %c1_49 = arith.constant 1 : index
    %c1_50 = arith.constant 1 : index
    %c0_51 = arith.constant 0 : index
    %c0_52 = arith.constant 0 : index
    %45 = vector.load %arg2[%c1_49, %c1_50, %c0_51, %c0_52] : memref<2x2x4x4xf32, #tpu.memory_space<vmem>>, vector<1x1x4x4xf32>
    %46 = vector.shape_cast %45 : vector<1x1x4x4xf32> to vector<4x4xf32>
    %cst_53 = arith.constant dense<0.000000e+00> : vector<4x128xf32>
    %47 = tpu.matmul %46, %41, %cst_53 {dimension_numbers = #tpu.dot_dimension_numbers<[1], [0], [0], [1], [0, 0, 1, 1], [], []>} : vector<4x4xf32>, vector<4x128xf32>, vector<4x128xf32> -> vector<4x128xf32>
    %c0_54 = arith.constant 0 : index
    %c0_55 = arith.constant 0 : index
    %c126 = arith.constant 126 : index
    %48 = vector.load %arg7[%c0_54, %c0_55, %c126] : memref<1x4x256xf32, #tpu.memory_space<vmem>>, vector<1x4x128xf32>
    %49 = vector.shape_cast %48 : vector<1x4x128xf32> to vector<4x128xf32>
    %c1_56 = arith.constant 1 : index
    %c0_57 = arith.constant 0 : index
    %c0_58 = arith.constant 0 : index
    %c0_59 = arith.constant 0 : index
    %50 = vector.load %arg2[%c1_56, %c0_57, %c0_58, %c0_59] : memref<2x2x4x4xf32, #tpu.memory_space<vmem>>, vector<1x1x4x4xf32>
    %51 = vector.shape_cast %50 : vector<1x1x4x4xf32> to vector<4x4xf32>
    %cst_60 = arith.constant dense<0.000000e+00> : vector<4x128xf32>
    %52 = tpu.matmul %51, %49, %cst_60 {dimension_numbers = #tpu.dot_dimension_numbers<[1], [0], [0], [1], [0, 0, 1, 1], [], []>} : vector<4x4xf32>, vector<4x128xf32>, vector<4x128xf32> -> vector<4x128xf32>
    %53 = arith.addf %47, %52 : vector<4x128xf32>
    %c1_61 = arith.constant 1 : index
    %c0_62 = arith.constant 0 : index
    %c0_63 = arith.constant 0 : index
    %54 = vector.load %arg3[%c1_61, %c0_62, %c0_63] : memref<2x4x1xf32, #tpu.memory_space<vmem>>, vector<1x4x1xf32>
    %55 = vector.shape_cast %54 : vector<1x4x1xf32> to vector<4x1xf32>
    %56 = vector.broadcast %55 : vector<4x1xf32> to vector<4x128xf32>
    %57 = arith.addf %53, %56 : vector<4x128xf32>
    %cst_64 = arith.constant 0.000000e+00 : f32
    %58 = vector.broadcast %cst_64 : f32 to vector<4x128xf32>
    %59 = arith.maximumf %57, %58 : vector<4x128xf32>
    %c0_65 = arith.constant 0 : index
    %c0_66 = arith.constant 0 : index
    %c128_67 = arith.constant 128 : index
    %60 = vector.load %arg8[%c0_65, %c0_66, %c128_67] : memref<1x4x256xf32, #tpu.memory_space<vmem>>, vector<1x4x128xf32>
    %61 = vector.shape_cast %60 : vector<1x4x128xf32> to vector<4x128xf32>
    %62 = vector.shape_cast %59 : vector<4x128xf32> to vector<1x4x128xf32>
    tpu.vector_store %arg8[%c0_65, %c0_66, %c128_67], %62 {strides = array<i32>} : memref<1x4x256xf32, #tpu.memory_space<vmem>>, vector<1x4x128xf32>,
    %c1_68 = arith.constant 1 : index
    %c1_69 = arith.constant 1 : index
    %c0_70 = arith.constant 0 : index
    %c0_71 = arith.constant 0 : index
    %63 = vector.load %arg4[%c1_68, %c1_69, %c0_70, %c0_71] : memref<2x2x4x4xf32, #tpu.memory_space<vmem>>, vector<1x1x4x4xf32>
    %64 = vector.shape_cast %63 : vector<1x1x4x4xf32> to vector<4x4xf32>
    %cst_72 = arith.constant dense<0.000000e+00> : vector<4x128xf32>
    %65 = tpu.matmul %64, %59, %cst_72 {dimension_numbers = #tpu.dot_dimension_numbers<[1], [0], [0], [1], [0, 0, 1, 1], [], []>} : vector<4x4xf32>, vector<4x128xf32>, vector<4x128xf32> -> vector<4x128xf32>
    %c0_73 = arith.constant 0 : index
    %c0_74 = arith.constant 0 : index
    %c126_75 = arith.constant 126 : index
    %66 = vector.load %arg8[%c0_73, %c0_74, %c126_75] : memref<1x4x256xf32, #tpu.memory_space<vmem>>, vector<1x4x128xf32>
    %67 = vector.shape_cast %66 : vector<1x4x128xf32> to vector<4x128xf32>
    %c1_76 = arith.constant 1 : index
    %c0_77 = arith.constant 0 : index
    %c0_78 = arith.constant 0 : index
    %c0_79 = arith.constant 0 : index
    %68 = vector.load %arg4[%c1_76, %c0_77, %c0_78, %c0_79] : memref<2x2x4x4xf32, #tpu.memory_space<vmem>>, vector<1x1x4x4xf32>
    %69 = vector.shape_cast %68 : vector<1x1x4x4xf32> to vector<4x4xf32>
    %cst_80 = arith.constant dense<0.000000e+00> : vector<4x128xf32>
    %70 = tpu.matmul %69, %67, %cst_80 {dimension_numbers = #tpu.dot_dimension_numbers<[1], [0], [0], [1], [0, 0, 1, 1], [], []>} : vector<4x4xf32>, vector<4x128xf32>, vector<4x128xf32> -> vector<4x128xf32>
    %71 = arith.addf %65, %70 : vector<4x128xf32>
    %c1_81 = arith.constant 1 : index
    %c0_82 = arith.constant 0 : index
    %c0_83 = arith.constant 0 : index
    %72 = vector.load %arg5[%c1_81, %c0_82, %c0_83] : memref<2x4x1xf32, #tpu.memory_space<vmem>>, vector<1x4x1xf32>
    %73 = vector.shape_cast %72 : vector<1x4x1xf32> to vector<4x1xf32>
    %74 = vector.broadcast %73 : vector<4x1xf32> to vector<4x128xf32>
    %75 = arith.addf %71, %74 : vector<4x128xf32>
    %cst_84 = arith.constant 0.000000e+00 : f32
    %76 = vector.broadcast %cst_84 : f32 to vector<4x128xf32>
    %77 = arith.maximumf %75, %76 : vector<4x128xf32>
    %78 = arith.addf %77, %41 : vector<4x128xf32>
    %cst_85 = arith.constant 0.000000e+00 : f32
    %79 = vector.broadcast %cst_85 : f32 to vector<4x128xf32>
    %80 = arith.maximumf %78, %79 : vector<4x128xf32>
    %c0_86 = arith.constant 0 : index
    %c0_87 = arith.constant 0 : index
    %c0_88 = arith.constant 0 : index
    %81 = vector.load %arg6[%c0_86, %c0_87, %c0_88] : memref<1x4x128xf32, #tpu.memory_space<vmem>>, vector<1x4x128xf32>
    %82 = vector.shape_cast %81 : vector<1x4x128xf32> to vector<4x128xf32>
    %83 = vector.shape_cast %80 : vector<4x128xf32> to vector<1x4x128xf32>
    tpu.vector_store %arg6[%c0_86, %c0_87, %c0_88], %83 {strides = array<i32>} : memref<1x4x128xf32, #tpu.memory_space<vmem>>, vector<1x4x128xf32>,
    return
  }
  func.func @transform_0(%arg0: i32) -> (i32, i32, i32) {
    %c0_i32 = arith.constant 0 : i32
    %c0_i32_0 = arith.constant 0 : i32
    %c0_i32_1 = arith.constant 0 : i32
    return %arg0, %c0_i32, %c0_i32_0 : i32, i32, i32
  }
  func.func @transform_1(%arg0: i32) -> (i32, i32, i32, i32) {
    %c0_i32 = arith.constant 0 : i32
    %c0_i32_0 = arith.constant 0 : i32
    %c0_i32_1 = arith.constant 0 : i32
    %c0_i32_2 = arith.constant 0 : i32
    %c0_i32_3 = arith.constant 0 : i32
    return %c0_i32, %c0_i32_0, %c0_i32_1, %c0_i32_2 : i32, i32, i32, i32
  }
  func.func @transform_2(%arg0: i32) -> (i32, i32, i32) {
    %c0_i32 = arith.constant 0 : i32
    %c0_i32_0 = arith.constant 0 : i32
    %c0_i32_1 = arith.constant 0 : i32
    %c0_i32_2 = arith.constant 0 : i32
    return %c0_i32, %c0_i32_0, %c0_i32_1 : i32, i32, i32
  }
  func.func @transform_3(%arg0: i32) -> (i32, i32, i32, i32) {
    %c0_i32 = arith.constant 0 : i32
    %c0_i32_0 = arith.constant 0 : i32
    %c0_i32_1 = arith.constant 0 : i32
    %c0_i32_2 = arith.constant 0 : i32
    %c0_i32_3 = arith.constant 0 : i32
    return %c0_i32, %c0_i32_0, %c0_i32_1, %c0_i32_2 : i32, i32, i32, i32
  }
  func.func @transform_4(%arg0: i32) -> (i32, i32, i32) {
    %c0_i32 = arith.constant 0 : i32
    %c0_i32_0 = arith.constant 0 : i32
    %c0_i32_1 = arith.constant 0 : i32
    %c0_i32_2 = arith.constant 0 : i32
    return %c0_i32, %c0_i32_0, %c0_i32_1 : i32, i32, i32
  }
  func.func @transform_5(%arg0: i32) -> (i32, i32, i32) {
    %c0_i32 = arith.constant 0 : i32
    %c0_i32_0 = arith.constant 0 : i32
    %c0_i32_1 = arith.constant 0 : i32
    return %arg0, %c0_i32, %c0_i32_0 : i32, i32, i32
  }
}

</mosaic_0001>

<bundles_post_ra>
// kernel: tpu_custom_call.1
= control target key start
LH: loop header
LB: loop body
LE: loop exit
PB: predicated region body
PF: predicated region fallthrough
CT: control target
= control target key end

     0   :  { %10 = vsyncpa [#allocation5], 0  ;;  %s1610_s0 = inlined_call_operand.hbm [shape: f32[2,4,128], index: 0, kind: input, shape index: {}]   ;;  %s1611_s1 = inlined_call_operand.vmem [shape: f32[2,2,4,4], index: 1, kind: input, shape index: {}]   ;;  %s1612_s2 = inlined_call_operand.vmem [shape: f32[2,4,1], index: 2, kind: input, shape index: {}]   ;;  %s1613_s3 = inlined_call_operand.hbm [shape: f32[2,2,4,4], index: 3, kind: input, shape index: {}]   ;;  %s1614_s4 = inlined_call_operand.vmem [shape: f32[2,4,1], index: 4, kind: input, shape index: {}]   ;;  %s1615_s5 = inlined_call_operand.hbm [shape: f32[2,4,128], index: 5, kind: output, shape index: {}]  }
   0x1   :  { %12 = vsyncpa [#allocation5 + $0x1], 0 }
   0x2   :  { %13 = vsyncpa [#allocation8], 0 }
   0x3   :  { %14 = vsyncpa [#allocation6], 0 }
   0x4   :  { %16 = vsyncpa [#allocation6 + $0x1], 0  ;;  %s1374_s18 = smov 0   ;;  %s1376_s19 = smov 0  }
   0x5   :  { %s1378_s20 = smov 0   ;;  %s1380_s21 = smov 0  }
   0x6 LB: > { %s1395_s22 = sadd.s32 4294967295, %s1332_s21   ;;  %s1049_s23 = sadd.s32 4294967294, %s1332_s21   ;;  %s1332_s21 = sphi %s1380_s21, %s1637_s21   ;;  %s1328_s20 = sphi %s1378_s20, %s1636_s20   ;;  %s1324_s19 = sphi %s1376_s19, %s1635_s19   ;;  %s1320_s18 = sphi %s1374_s18, %s1634_s18  }
   0x7   : > { %p42_p0 = scmp.ne.s32.totalorder %s1324_s19, %s1320_s18  ;;  %p1616_p1 = scmp.eq.s32.totalorder %s1395_s22, 0 }
   0x8   : > { %p156_p3 = scmp.eq.s32.totalorder %s1049_s23, 1  ;;  %p1050_p5 = scmp.ge.s32.totalorder %s1332_s21, 1 }
   0x9   : > { %p1404_p4 = por %p1616_p1, %p42_p0  ;;  %p163_p7 = scmp.lt.s32.totalorder %s1332_s21, 3 }
   0xa   : > { %p1409_p6 = por %p156_p3, %p42_p0  ;;  %s1334_s27 = smov [#allocation7]  }
   0xb   : > { %s1620_s24 = scalar_select %p1404_p4, 1, 0 }
   0xc   : > { %s1621_s25 = scalar_select %p1409_p6, 1, 0 }
   0xd   : > { %p1414_p8 = pnand %p1050_p5, %p163_p7  ;;  %s181_s28 = sshll.u32 %s1334_s27, 4  ;;  %s182_s28 = int_to_ptr.vmem [resolvable:$true] %s181_s28 }
   0xe   : > { %s1428_s30 = sadd.s32 1, %s1332_s21   ;;  %s29_s6 = sadd.s32 1, %s1328_s20 }
   0xf   : > { %s1622_s26 = scalar_select %p1414_p8, 1, 0 }
  0x10   : > { %p1148_p9 = pneg %p1414_p8  ;;  %s26_s7 = ssub.s32 %s1332_s21, %s1428_s30 }
  0x11   : > { %s1221_s8 = scalar_lea.vmem %s182_s28, 256  ;;  %p1229_p5 = scmp.lt.s32.totalorder %s182_s28, %s182_s28 }
  0x12   : > { %p1423_p11 = pnand %p1148_p9, %p1616_p1  ;;  %p1222_p13 = scmp.ne.s32.totalorder %s182_s28, %s1221_s8 }
  0x13   : > { %p1230_p7 = scmp.lt.s32.totalorder %s1221_s8, %s1221_s8 }
  0x14   : > { %p1212_p12 = pneg %p1423_p11 }
  0x15   : > { %p1231_p10 = por %p1230_p7, %p1229_p5 }
  0x16   : > { %p1224_p0 = pnand %p1222_p13, %p1212_p12 }
  0x18   : > { %p1225_p3 = pneg %p1224_p0 }
  0x1a   : > { %p1232_p2 = pnand %p1231_p10, %p1225_p3 }
  0x1c   : > { %1235 = shalt.err (!%p1232_p2)
}
  0x1d   : > { %s1335_s9 = smov 64   ;;  %s1336_s10 = smov 4  }
  0x1e   : > { %1151 = dma.hbm_to_vmem [thread:$0]  (!%p1423_p11), %s1613_s3, 256, %s182_s28, [#allocation8], %s1335_s9, %s1335_s9, %s1336_s10  }
  0x1f   : > { %p27_p9 = scmp.eq.s32.totalorder %s26_s7, 0  ;;  %p36_p12 = scmp.ne.s32.totalorder %s1328_s20, %s1324_s19 }
  0x20   : > { %p37_p10 = scmp.eq.s32.totalorder %s1332_s21, 0  ;;  %p1161_p2 = scmp.lt.s32.totalorder %s1332_s21, 2 }
  0x21   : > { %s1445_s13 = scalar_select %p27_p9, %s1328_s20, %s29_s6  }
  0x22   : > { %p38_p13 = por %p37_p10, %p36_p12  ;;  %p1624_p0 = scmp.eq.s32.totalorder %s1395_s22, 1 }
  0x23   : > { %s198_s15 = sand.u32 1, %s1328_s20   ;;  %s1054_s16 = sshll.u32 %s1332_s21, 6 }
  0x24   : > { %p1449_p3 = por %p1624_p0, %p36_p12  ;;  %s1053_s17 = sshll.u32 %s198_s15, 2 }
  0x25   : > { %s1458_s29 = scalar_lea.hbm %s1610_s0, %s1054_s16  ;;  %s202_s28 = scalar_lea.vmem [#allocation4], %s1053_s17 }
  0x26   : > { %s1625_s14 = scalar_select %p1449_p3, 1, 0 }
  0x27   : > { %s209_s6 = sshll.u32 %s202_s28, 4  ;;  %p1460_p11 = pnand %p1161_p2, %p38_p13  ;;  %s210_s6 = int_to_ptr.vmem [resolvable:$true] %s209_s6 }
  0x28   : > { %s199_s8 = scalar_lea.sflag [#allocation5], %s198_s15  ;;  %s1236_s9 = scalar_lea.hbm %s1458_s29, 64 }
  0x29   : > { %p1237_p5 = scmp.ne.s32.totalorder %s1458_s29, %s1236_s9  ;;  %p1238_p7 = pneg %p1460_p11 }
  0x2a   : > { %s1241_s12 = scalar_lea.hbm %s1610_s0, 128  ;;  %p1242_p10 = scmp.lt.s32.totalorder %s1458_s29, %s1610_s0 }
  0x2b   : > { %p1239_p9 = pnand %p1238_p7, %p1237_p5  ;;  %p1243_p2 = scmp.lt.s32.totalorder %s1241_s12, %s1236_s9 }
  0x2d   : > { %p1240_p12 = pneg %p1239_p9  ;;  %p1244_p13 = por %p1243_p2, %p1242_p10 }
  0x2f   : > { %p1245_p0 = pnand %p1244_p13, %p1240_p12 }
  0x31   : > { %1248 = shalt.err (!%p1245_p0)
}
  0x32   : > { %s1249_s23 = scalar_lea.vmem %s210_s6, 64  ;;  %s1337_s15 = smov [#allocation4]  }
  0x33   : > { %p1250_p1 = scmp.ne.s32.totalorder %s210_s6, %s1249_s23  ;;  %s1254_s27 = sshll.u32 %s1337_s15, 4  ;;  %s1255_s27 = int_to_ptr.vmem [resolvable:$false] %s1254_s27 }
  0x34   : > { %s1256_s28 = scalar_lea.vmem %s1255_s27, 128  ;;  %p1257_p5 = scmp.lt.s32.totalorder %s210_s6, %s1255_s27 }
  0x35   : > { %p1252_p6 = pnand %p1250_p1, %p1238_p7  ;;  %p1258_p9 = scmp.lt.s32.totalorder %s1256_s28, %s1249_s23 }
  0x37   : > { %p1253_p3 = pneg %p1252_p6  ;;  %p1259_p4 = por %p1258_p9, %p1257_p5 }
  0x39   : > { %p1260_p8 = pnand %p1259_p4, %p1253_p3 }
  0x3b   : > { %1263 = shalt.err (!%p1260_p8)
}
  0x3c   : > { %1155 = dma.hbm_to_vmem [thread:$0]  (!%p1460_p11), %s1458_s29, 64, %s210_s6, %s199_s8  }
  0x3d   : > { %p1627_p12 = scmp.ne.s32.totalorder %s1622_s26, 0 }
  0x3e   : > { %s1481_s9 = sand.u32 (!%p1627_p12), 1, %s1324_s19   ;;  %p1628_p1 = scmp.ne.s32.totalorder (!%p1627_p12), %s1620_s24, 0 }
  0x3f   : > { %218 = sbr.rel (%p1627_p12) target bundleno = 1403 (0x57b), region = 40  ;;  %s1056_s10 = sshll.u32 (!%p1627_p12), %s1481_s9, 2 }
  0x40   : > { %s221_s11 = scalar_lea.sflag (!%p1627_p12), [#allocation5], %s1481_s9  ;;  %s224_s12 = scalar_lea.vmem (!%p1627_p12), [#allocation4], %s1056_s10 }
  0x44   : > { %1307 = dma.done.wait (%p1628_p1), %s221_s11, 64  }
  0x45   : > { %1309 = vsyncadd (%p1628_p1), %s221_s11, 4294967232  ;;  %p1629_p4 = scmp.eq.s32.totalorder %s1395_s22, 0 }
  0x47   : > { %1311 = dma.done.wait (%p1629_p4), [#allocation8], 256   ;;  %p1630_p6 = pmov %p1629_p4 }
  0x48   : > { %v1338_v0 = vmov 0.0   ;;  %vm1339_vm0 = vmmov 0   ;;  %vm275_vm1 = vcmask 1043456   ;;  %vm271_vm2 = vcmask 31744   ;;  %v257_v1 = vld [vmem:[%s224_s12] sm:$0xf] }
  0x49   : > { %1313 = vsyncadd (%p1630_p6), [#allocation8], 4294967040  ;;  %255 = vst [vmem:[#allocation2] sm:$0xf] %v1338_v0  ;;  %1105 = vmatprep.subr.mxu1 %v1338_v0  ;;  %1100 = vmatprep.subr.mxu0 %v1338_v0  ;;  %v1059_v2 = vld [vmem:[%s1611_s1 + $0x4] sm:$0xf] }
  0x4a   : > { %256 = vst [vmem:[#allocation3] sm:$0xf] %v1338_v0  ;;  %1107 = vmatprep.mubr.msk.f32.mxu1 %vm1339_vm0, %v1338_v0  ;;  %1102 = vmatprep.mubr.msk.f32.mxu0 %vm1339_vm0, %v1338_v0  ;;  %258 = vst [vmem:[#allocation2 + $0x4] sm:$0xf] %v257_v1  ;;  %v424_v3 = vld [vmem:[%s1612_s2] sm:$0xf] }
  0x4b   : > { %1106 = vmatpush3.msk.msra.mxu1 %vm275_vm1, %v257_v1  ;;  %v1340_v4 = vmov 0   ;;  %s1341_s7 = smov 1   ;;  %vm269_vm3 = vcmask 7168   ;;  %v262_v9 = vld [vmem:[%s1611_s1] sm:$0xf]  ;;  %s1342_s28 = smov 2  }
  0x4c   : > { %1108 = vmatmul.mubr.msk.f32.vlgmr.msra.gmra.mxu1 %vm271_vm2, %v1059_v2  ;;  %1115 = vmatprep.subr.mxu1 %v1338_v0  ;;  %v434_v19 = vld [vmem:[#allocation7 + $0x4] sm:$0xf]  ;;  %v595_v22 = vld [vmem:[%s1614_s4] sm:$0xf]  ;;  %v436_v25 = vld [vmem:[#allocation7] sm:$0xf] }
  0x4d   : > { %1204 = vset.pattern.permute.xlu1 %v1340_v4  ;;  %1117 = vmatprep.mubr.msk.f32.mxu1 %vm1339_vm0, %v1338_v0  ;;  %v1068_v37 = vld [vmem:[%s1611_s1 + $0xc] sm:$0xf]  ;;  %v1074_v40 = vld [vmem:[%s1612_s2 + $0x4] sm:$0xf]  ;;  %vm617_vm4 = vcmask 15360   ;;  %s254_s8 = scalar_lea.vmem [#allocation9], %s1056_s10 }
  0x4e   : > { %427 = vperm.xlu1 %1204, %v424_v3   ;;  %1205 = vset.pattern.permute.xlu0 %v1340_v4  ;;  %v1079_v41 = vld [vmem:[%s1614_s4 + $0x4] sm:$0xf]  ;;  %v1069_v44 = vld [vmem:[%s1611_s1 + $0x8] sm:$0xf]  ;;  %v784_v59 = vld [vmem:[#allocation7 + $0x8] sm:$0xf] }
  0x4f   : > { %v781_v54 = vld [vmem:[#allocation7 + $0xc] sm:$0xf]  ;;  %s969_s16 = sshll.u32 %s254_s8, 4  ;;  %s956_s27 = scalar_lea.sflag [#allocation6], %s1481_s9  ;;  %s970_s16 = int_to_ptr.vmem [resolvable:$true] %s969_s16 }
  0x50   : > { %p1631_p3 = scmp.ne.s32.totalorder %s1625_s14, 0  ;;  %s1343_s11 = smov [#allocation9]  }
  0x51   : > { %v261_v5 = vld [vmem:[#allocation2] sm:$0xff]  ;;  %s1268_s12 = sshll.u32 %s1343_s11, 4  ;;  %s1269_s12 = int_to_ptr.vmem [resolvable:$false] %s1268_s12 }
  0x52   : > { %265 = vrot.lane.b32.xlu0 %v261_v5, %s1341_s7  ;;  %v264_v6 = vcombine.high %v261_v5, %v261_v5  ;;  %p1271_p10 = scmp.lt.s32.totalorder %s970_s16, %s1269_s12 }
  0x56   : > { %267 = vrot.lane.b32.xlu0 %v264_v6, %s1341_s7 }
  0xc4   : > { %v266_v7 = vpop.permute.xlu0 %265 }
  0xc8   : > { %v268_v8 = vpop.permute.xlu0 %267 }
  0xc9   : > { %v270_v10 = vsel %vm269_vm3, %v266_v7, %v268_v8  ;;  %v428_v14 = vpop.permute.xlu1 %427 }
  0xca   : > { %1101 = vmatpush3.msk.msra.mxu0 %vm275_vm1, %v270_v10 }
  0xcb   : > { %1103 = vmatmul.mubr.msk.f32.vlgmr.msra.gmra.mxu0 %vm271_vm2, %v262_v9  ;;  %1110 = vmatprep.subr.mxu0 %v1338_v0 }
  0xcc   : > { %1112 = vmatprep.mubr.msk.f32.mxu0 %vm1339_vm0, %v1338_v0 }
 0x10c   : > { %v420_v11 = vpop.f32.mrf.mxu1 }
 0x10e   : > { %v1109_v12 = vpop.f32.mrf.mxu1 }
 0x18b   : > { %v344_v13 = vpop.f32.mrf.mxu0 }
 0x18c   : > { %v421_v15 = vadd.f32 %v420_v11, %v344_v13 }
 0x18d   : > { %v1104_v16 = vpop.f32.mrf.mxu0 }
 0x18e   : > { %v430_v17 = vadd.f32 %v428_v14, %v421_v15 }
 0x190   : > { %v431_v18 = vmax.f32 %v430_v17, 0.0 }
 0x192   : > { %432 = vst [vmem:[#allocation3 + $0x4] sm:$0xf] %v431_v18  ;;  %1116 = vmatpush3.msk.msra.mxu1 %vm275_vm1, %v431_v18 }
 0x193   : > { %1118 = vmatmul.mubr.msk.f32.vlgmr.msra.gmra.mxu1 %vm271_vm2, %v434_v19  ;;  %1125 = vmatprep.subr.mxu1 %v1338_v0 }
 0x194   : > { %1127 = vmatprep.mubr.msk.f32.mxu1 %vm1339_vm0, %v1338_v0 }
 0x199   : > { %v435_v20 = vld [vmem:[#allocation3] sm:$0xff] }
 0x19a   : > { %439 = vrot.lane.b32.xlu1 %v435_v20, %s1341_s7  ;;  %v438_v21 = vcombine.high %v435_v20, %v435_v20 }
 0x19c   : > { %441 = vrot.lane.b32.xlu0 %v438_v21, %s1341_s7  ;;  %s1081_s7 = sshll.u32 %s1395_s22, 6  ;;  %s1270_s22 = scalar_lea.vmem %s1269_s12, 128 }
 0x19d   : > { %s967_s15 = scalar_lea.hbm %s1615_s5, %s1081_s7 }
 0x19e   : > { %598 = vperm.xlu1 %1204, %v595_v22  }
 0x20c   : > { %v440_v23 = vpop.permute.xlu1 %439 }
 0x20e   : > { %v442_v24 = vpop.permute.xlu0 %441 }
 0x20f   : > { %v443_v26 = vsel %vm269_vm3, %v440_v23, %v442_v24 }
 0x210   : > { %1111 = vmatpush3.msk.msra.mxu0 %vm275_vm1, %v443_v26 }
 0x211   : > { %1113 = vmatmul.mubr.msk.f32.vlgmr.msra.gmra.mxu0 %vm271_vm2, %v436_v25  ;;  %1120 = vmatprep.subr.mxu0 %v1338_v0 }
 0x212   : > { %1122 = vmatprep.mubr.msk.f32.mxu0 %vm1339_vm0, %v1338_v0 }
 0x219   : > { %v599_v31 = vpop.permute.xlu1 %598 }
 0x253   : > { %v591_v27 = vpop.f32.mrf.mxu1 }
 0x255   : > { %v1119_v28 = vpop.f32.mrf.mxu1 }
 0x2d1   : > { %v515_v29 = vpop.f32.mrf.mxu0 }
 0x2d2   : > { %v592_v30 = vadd.f32 %v591_v27, %v515_v29 }
 0x2d3   : > { %v1114_v32 = vpop.f32.mrf.mxu0 }
 0x2d4   : > { %v601_v33 = vadd.f32 %v599_v31, %v592_v30 }
 0x2d6   : > { %v602_v34 = vmax.f32 %v601_v33, 0.0 }
 0x2d8   : > { %v603_v35 = vadd.f32 %v602_v34, %v257_v1 }
 0x2da   : > { %v604_v36 = vmax.f32 %v603_v35, 0.0 }
 0x2dc   : > { %605 = vst [vmem:[#allocation2 + $0x4] sm:$0xf] %v604_v36  ;;  %1126 = vmatpush3.msk.msra.mxu1 %vm275_vm1, %v604_v36 }
 0x2dd   : > { %1128 = vmatmul.mubr.msk.f32.vlgmr.msra.gmra.mxu1 %vm271_vm2, %v1068_v37  ;;  %1135 = vmatprep.subr.mxu1 %v1338_v0 }
 0x2de   : > { %1137 = vmatprep.mubr.msk.f32.mxu1 %vm1339_vm0, %v1338_v0 }
 0x2e3   : > { %v608_v38 = vld [vmem:[#allocation2] sm:$0xff] }
 0x2e4   : > { %613 = vrot.lane.b32.xlu0 %v608_v38, %s1342_s28  ;;  %v612_v39 = vcombine.high %v608_v38, %v608_v38 }
 0x2e6   : > { %615 = vrot.lane.b32.xlu1 %v612_v39, %s1342_s28 }
 0x2e8   : > { %774 = vperm.xlu0 %1205, %v1074_v40  }
 0x2ec   : > { %947 = vperm.xlu0 %1205, %v1079_v41  }
 0x356   : > { %v614_v42 = vpop.permute.xlu0 %613 }
 0x358   : > { %v616_v43 = vpop.permute.xlu1 %615 }
 0x359   : > { %v618_v45 = vsel %vm617_vm4, %v614_v42, %v616_v43 }
 0x35a   : > { %1121 = vmatpush3.msk.msra.mxu0 %vm275_vm1, %v618_v45 }
 0x35b   : > { %1123 = vmatmul.mubr.msk.f32.vlgmr.msra.gmra.mxu0 %vm271_vm2, %v1069_v44  ;;  %1130 = vmatprep.subr.mxu0 %v1338_v0 }
 0x35c   : > { %1132 = vmatprep.mubr.msk.f32.mxu0 %vm1339_vm0, %v1338_v0 }
 0x363   : > { %v775_v50 = vpop.permute.xlu0 %774 }
 0x367   : > { %v948_v1 = vpop.permute.xlu0 %947 }
 0x39d   : > { %v766_v46 = vpop.f32.mrf.mxu1 }
 0x39f   : > { %v1129_v47 = vpop.f32.mrf.mxu1 }
 0x41b   : > { %v690_v48 = vpop.f32.mrf.mxu0 }
 0x41c   : > { %v767_v49 = vadd.f32 %v766_v46, %v690_v48 }
 0x41d   : > { %v1124_v51 = vpop.f32.mrf.mxu0 }
 0x41e   : > { %v777_v52 = vadd.f32 %v775_v50, %v767_v49 }
 0x420   : > { %v778_v53 = vmax.f32 %v777_v52, 0.0 }
 0x422   : > { %779 = vst [vmem:[#allocation3 + $0x4] sm:$0xf] %v778_v53  ;;  %1136 = vmatpush3.msk.msra.mxu1 %vm275_vm1, %v778_v53 }
 0x423   : > { %1138 = vmatmul.mubr.msk.f32.vlgmr.msra.gmra.mxu1 %vm271_vm2, %v781_v54 }
 0x429   : > { %v782_v55 = vld [vmem:[#allocation3] sm:$0xff] }
 0x42a   : > { %787 = vrot.lane.b32.xlu1 %v782_v55, %s1342_s28  ;;  %v786_v56 = vcombine.high %v782_v55, %v782_v55 }
 0x42e   : > { %789 = vrot.lane.b32.xlu1 %v786_v56, %s1342_s28  ;;  %s1264_s28 = scalar_lea.vmem %s970_s16, 64 }
 0x42f   : > { %p1265_p8 = scmp.ne.s32.totalorder %s970_s16, %s1264_s28  ;;  %p1272_p2 = scmp.lt.s32.totalorder %s1270_s22, %s1264_s28 }
 0x431   : > { %p1266_p11 = pnand %p1265_p8, %p1631_p3  ;;  %p1273_p13 = por %p1272_p2, %p1271_p10 }
 0x433   : > { %p1267_p7 = pneg %p1266_p11 }
 0x435   : > { %p1274_p0 = pnand %p1273_p13, %p1267_p7 }
 0x49c   : > { %v788_v57 = vpop.permute.xlu1 %787 }
 0x4a0   : > { %v790_v58 = vpop.permute.xlu1 %789 }
 0x4a1   : > { %v791_v60 = vsel %vm617_vm4, %v788_v57, %v790_v58 }
 0x4a2   : > { %1131 = vmatpush3.msk.msra.mxu0 %vm275_vm1, %v791_v60 }
 0x4a3   : > { %1133 = vmatmul.mubr.msk.f32.vlgmr.msra.gmra.mxu0 %vm271_vm2, %v784_v59 }
 0x4e3   : > { %v939_v61 = vpop.f32.mrf.mxu1 }
 0x4e5   : > { %v1139_v62 = vpop.f32.mrf.mxu1 }
 0x563   : > { %v863_v63 = vpop.f32.mrf.mxu0 }
 0x564   : > { %v940_v0 = vadd.f32 %v939_v61, %v863_v63 }
 0x565   : > { %v1134_v2 = vpop.f32.mrf.mxu0 }
 0x566   : > { %v950_v3 = vadd.f32 %v948_v1, %v940_v0 }
 0x568   : > { %v951_v4 = vmax.f32 %v950_v3, 0.0 }
 0x56a   : > { %v952_v5 = vadd.f32 %v951_v4, %v604_v36 }
 0x56c   : > { %v953_v6 = vmax.f32 %v952_v5, 0.0 }
 0x56e   : > { %954 = vst [vmem:[%s254_s8] sm:$0xf] %v953_v6 }
 0x56f   : > { %1277 = shalt.err (!%p1274_p0)
}
 0x570   : > { %s1278_s10 = scalar_lea.hbm %s967_s15, 64  ;;  %s1282_s26 = scalar_lea.hbm %s1615_s5, 128 }
 0x571   : > { %p1279_p5 = scmp.ne.s32.totalorder %s967_s15, %s1278_s10  ;;  %p1283_p1 = scmp.lt.s32.totalorder %s967_s15, %s1615_s5 }
 0x572   : > { %p1284_p4 = scmp.lt.s32.totalorder %s1282_s26, %s1278_s10 }
 0x573   : > { %p1280_p9 = pnand %p1279_p5, %p1631_p3 }
 0x574   : > { %p1285_p6 = por %p1284_p4, %p1283_p1 }
 0x575   : > { %p1281_p12 = pneg %p1280_p9 }
 0x577   : > { %p1286_p8 = pnand %p1285_p6, %p1281_p12 }
 0x579   : > { %1289 = shalt.err (!%p1286_p8)
}
 0x57a   : > { %1146 = dma.vmem_to_hbm [thread:$0]  (%p1631_p3), %s970_s16, 64, %s967_s15, %s956_s27  }
 0x57b PF: > { %s981_s7 = sand.u32 1, %s1320_s18   ;;  %p1632_p11 = scmp.ne.s32.totalorder %s1621_s25, 0 }
 0x57c   : > { %p1633_p7 = scmp.ge.s32.totalorder %s1332_s21, 2  ;;  %s982_s8 = scalar_lea.sflag [#allocation6], %s981_s7 }
 0x57e   : > { %p1157_p10 = pnand %p1633_p7, %p1632_p11 }
 0x580   : > { %p1158_p2 = pneg %p1157_p10 }
 0x582   : > { %1315 = dma.done.wait (%p1158_p2), %s982_s8, 64  }
 0x583   : > { %1317 = vsyncadd (%p1158_p2), %s982_s8, 4294967232  ;;  %p19_p13 = scmp.ge.s32.totalorder %s1428_s30, 4   ;;  %s1634_s18 = smov %s1324_s19 }
 0x584   : > { %s1635_s19 = smov %s1328_s20  ;;  %s1636_s20 = smov %s1445_s13 }
 0x585   : > { %s1637_s21 = smov %s1428_s30  ;;  %21 = sbr.rel (!%p19_p13) target bundleno = 6 (0x6), region = 97 }
 0x58a   :  { %987 = vsyncpa [#allocation5], 1 }
 0x58b   :  { %989 = vsyncpa [#allocation5 + $0x1], 1 }
 0x58c   :  { %990 = vsyncpa [#allocation8], 1 }
 0x58d   :  { %991 = vsyncpa [#allocation6], 1 }
 0x58e   :  { %993 = vsyncpa [#allocation6 + $0x1], 1 }

</bundles_post_ra>
